<compile_context>
chip_gen: v7x
topology: tpu7x:2x2x1
jax: 0.10.0
libtpu: 0.0.40
codegen_flags: <defaults>
</compile_context>

<pallas_src>
import numpy as np
import jax
import jax.numpy as jnp
from jax import lax
from jax.experimental import pallas as pl
from jax.experimental.pallas import tpu as pltpu

NEG_SLOPE = 0.2            # TODO(synk): LeakyReLU slope assumed for ConvBlock
MXU_DTYPE = jnp.bfloat16   # MXU-operand dtype (accumulation stays f32)


def _round_up(x, m):
    return (x + m - 1) // m * m


# ------------------------- weight packing (init-time) ----------------------- #
def _pack_block_weights(w, b, w_in, stride, padding):
    """Pack a ConvBlock Conv2d into ONE (KH*cin*w_in, cout*wo) Toeplitz matrix.

    Kernel operand columns are kh*(cin*w_in) + ci*w_in + js (the KH strided-row
    reads concatenated along lanes); width zero-padding is folded in by
    omitting out-of-range taps.
    """
    w = np.asarray(w, np.float32)
    b = np.asarray(b, np.float32)
    cout, cin, KH, KW = w.shape
    wo = (w_in + 2 * padding - KW) // stride + 1
    T = np.zeros((KH, cin * w_in, cout * wo), np.float32)
    ci_idx = np.arange(cin)
    co_idx = np.arange(cout)
    for kh in range(KH):
        for kw in range(KW):
            for jo in range(wo):
                js = stride * jo + kw - padding
                if 0 <= js < w_in:
                    T[kh, (ci_idx * w_in + js)[:, None],
                          (co_idx * wo + jo)[None, :]] = w[:, :, kh, kw].T
    T = T.reshape(KH * cin * w_in, cout * wo)
    bias_row = np.repeat(b, wo)[None, :]                      # (1, cout*wo)
    return jnp.asarray(T, MXU_DTYPE), jnp.asarray(bias_row, jnp.float32)


def _pack_output_weights(w, b, w_in):
    """Pack the Cout=1 output Conv2d (stride 1, pad 0) as (KH*cin*w_in, wo)."""
    w = np.asarray(w, np.float32)
    b = np.asarray(b, np.float32)
    cout, cin, KH, KW = w.shape
    assert cout == 1, "output conv is expected to have a single channel"
    wo = w_in - KW + 1
    Wv = np.zeros((KH, cin * w_in, wo), np.float32)
    ci_idx = np.arange(cin)
    for kh in range(KH):
        for jo in range(wo):
            for kw in range(KW):
                Wv[kh, ci_idx * w_in + jo + kw, jo] = w[0, :, kh, kw]
    Wv = Wv.reshape(KH * cin * w_in, wo)
    return jnp.asarray(Wv, MXU_DTYPE), jnp.asarray(b.reshape(1, 1), jnp.float32)


def pack_eeg_critic(params, input_hw, stride, padding):
    """One-time weight packing (outside the per-call hot path)."""
    H, W = input_hw
    block_params = [params["input"]] + list(params["critic"])
    blocks, mats = [], []
    h, w = H, W
    for (wgt, bias) in block_params:
        cout, cin, KH, KW = wgt.shape
        ho = (h + 2 * padding - KH) // stride + 1
        wo = (w + 2 * padding - KW) // stride + 1
        assert ho > 0 and wo > 0
        # strided reads stay inside the padded image: (ho-1)*s + KH-1 <= h+2p-1
        assert (ho - 1) * stride + KH - 1 <= h + 2 * padding - 1
        T, brow = _pack_block_weights(wgt, bias, w, stride, padding)
        mats.append((T, brow))
        blocks.append(dict(cin=cin, cout=cout, h=h, w=w, ho=ho, wo=wo,
                           pad=padding, stride=stride, kh=KH))
        h, w = ho, wo
    w_out, b_out = params["output"]
    KH_o = w_out.shape[2]
    assert h >= KH_o and w >= KH_o, "output conv needs spatial dims >= kernel"
    wv, bo = _pack_output_weights(w_out, b_out, w)
    out_cfg = dict(h=h, w=w, ho=h - KH_o + 1, wo=w - KH_o + 1, kh=KH_o)
    packed = {"blocks": mats, "wv": wv, "bo": bo}
    cfg = {"blocks": blocks, "out": out_cfg}
    return packed, cfg


# ------------------------------ fused kernel -------------------------------- #
def make_fused_kernel(blocks, out_cfg):
    L = len(blocks)

    def kernel(*refs):
        a0_ref = refs[0]                                  # (hp0_al, C*W) this image
        t_refs = [refs[1 + 2 * l] for l in range(L)]
        b_refs = [refs[2 + 2 * l] for l in range(L)]
        wv_ref = refs[1 + 2 * L]
        bo_ref = refs[2 + 2 * L]
        out_ref = refs[3 + 2 * L]                         # (ho_f, wo_f)
        bufs = (refs[4 + 2 * L], refs[5 + 2 * L])         # ping-pong VMEM scratch

        # ---- ConvBlock stack: ONE bf16 MXU matmul + bias + LeakyReLU per layer ----
        src = a0_ref
        src_cols = blocks[0]["cin"] * blocks[0]["w"]
        for l, blk in enumerate(blocks):
            dst = bufs[l % 2]
            ho, wo, cout = blk["ho"], blk["wo"], blk["cout"]
            s, KH = blk["stride"], blk["kh"]
            nxt_pad = blocks[l + 1]["pad"] if l + 1 < L else 0   # output conv: pad 0
            dst_cols = cout * wo

            # Zero only the next layer's height-padding rows (interior rows are
            # fully overwritten below; alignment filler rows are never read).
            if nxt_pad > 0:
                zpad = jnp.zeros((nxt_pad, dst_cols), jnp.float32)
                dst[pl.ds(0, nxt_pad), pl.ds(0, dst_cols)] = zpad
                dst[pl.ds(nxt_pad + ho, nxt_pad), pl.ds(0, dst_cols)] = zpad

            # im2col: KH strided-row reads concatenated along lanes -> one matmul
            # with K = KH*cin*w instead of KH separate (.,128)@(128,128) dots.
            taps = []
            for kh in range(KH):
                if s == 1:
                    taps.append(src[pl.ds(kh, ho), pl.ds(0, src_cols)])
                else:
                    taps.append(src[pl.ds(kh, ho, stride=s), pl.ds(0, src_cols)])
            rows = jnp.concatenate(taps, axis=-1).astype(MXU_DTYPE)
            acc = jnp.dot(rows, t_refs[l][...],
                          preferred_element_type=jnp.float32)   # (ho, cout*wo) f32
            acc = acc + b_refs[l][...]
            acc = jnp.where(acc >= 0.0, acc, NEG_SLOPE * acc)    # LeakyReLU(0.2)
            # TODO(synk): Dropout is identity here (eval-mode forward).
            dst[pl.ds(nxt_pad, ho), pl.ds(0, dst_cols)] = acc
            src, src_cols = dst, dst_cols

        # ---- output Conv2d (Cout=1, stride 1, pad 0): one small matmul ----
        ho_f, wo_f, kh_f = out_cfg["ho"], out_cfg["wo"], out_cfg["kh"]
        taps = [src[pl.ds(kh, ho_f), pl.ds(0, src_cols)] for kh in range(kh_f)]
        rows = jnp.concatenate(taps, axis=-1).astype(MXU_DTYPE)
        res = jnp.dot(rows, wv_ref[...], preferred_element_type=jnp.float32)
        out_ref[...] = res + bo_ref[...]

    return kernel


def eeg_critic_forward(packed, cfg, x_nchw):
    """Fused forward: ONE pallas_call, grid over the (independent) images."""
    blocks, out_cfg = cfg["blocks"], cfg["out"]
    N = x_nchw.shape[0]
    L = len(blocks)
    b0 = blocks[0]
    pad, H, W, C = b0["pad"], b0["h"], b0["w"], b0["cin"]
    hp0 = H + 2 * pad
    hp0_al = _round_up(hp0, 8)          # 8-sublane-aligned per-image row block

    # Per-call input layout prep (3 tiny XLA ops for the whole network):
    # NCHW -> zero-pad H (plus alignment filler rows, never read) ->
    # (N, hp0_al, C*W) with channel-major columns.
    xp = jnp.pad(x_nchw.astype(jnp.float32),
                 ((0, 0), (0, 0), (pad, pad + hp0_al - hp0), (0, 0)))
    a0 = jnp.transpose(xp, (0, 2, 1, 3)).reshape(N, hp0_al, C * W)

    inputs = [a0]
    for T, brow in packed["blocks"]:
        inputs += [T, brow]
    inputs += [packed["wv"], packed["bo"]]

    # Two ping-pong VMEM scratch buffers sized to the largest intermediate
    # activation (only src/dst are live at any point), heights rounded to 8.
    max_rows, max_cols = 8, 128
    for l in range(L):
        blk = blocks[l]
        nxt_pad = blocks[l + 1]["pad"] if l + 1 < L else 0
        max_rows = max(max_rows, _round_up(blk["ho"] + 2 * nxt_pad, 8))
        max_cols = max(max_cols, blk["cout"] * blk["wo"])
    max_cols = _round_up(max_cols, 128)
    scratch = [pltpu.VMEM((max_rows, max_cols), jnp.float32),
               pltpu.VMEM((max_rows, max_cols), jnp.float32)]

    # Explicit VMEM budget: weights + double-buffered in/out blocks + scratch,
    # with generous headroom.
    plan_bytes = 2 * hp0_al * C * W * 4                    # double-buffered input block
    plan_bytes += 2 * out_cfg["ho"] * out_cfg["wo"] * 4    # double-buffered output block
    plan_bytes += 2 * max_rows * max_cols * 4              # ping-pong scratch
    for arr in inputs[1:]:
        plan_bytes += arr.size * arr.dtype.itemsize        # packed weights / biases
    vmem_limit = int(min(100 * 2 ** 20, max(8 * 2 ** 20, 4 * plan_bytes)))

    in_specs = [pl.BlockSpec((None, hp0_al, C * W), lambda n: (n, 0, 0))]
    in_specs += [pl.BlockSpec(memory_space=pltpu.MemorySpace.VMEM)] * (len(inputs) - 1)
    out_specs = pl.BlockSpec((None, out_cfg["ho"], out_cfg["wo"]),
                             lambda n: (n, 0, 0))

    out = pl.pallas_call(
        make_fused_kernel(blocks, out_cfg),
        out_shape=jax.ShapeDtypeStruct((N, out_cfg["ho"], out_cfg["wo"]),
                                       jnp.float32),
        grid=(N,),
        in_specs=in_specs,
        out_specs=out_specs,
        scratch_shapes=scratch,
        compiler_params=pltpu.CompilerParams(
            dimension_semantics=("parallel",),
            vmem_limit_bytes=vmem_limit),
    )(*inputs)
    return out[:, None, :, :].astype(x_nchw.dtype)   # NCHW: (N, 1, Hf, Wf)


# --------------------------- parameter creation ----------------------------- #
def _init_conv(key, cout, cin, k):
    k1, k2 = jax.random.split(key)
    fan_in = cin * k * k
    bound = 1.0 / (fan_in ** 0.5)
    w = jax.random.uniform(k1, (cout, cin, k, k), jnp.float32, -bound, bound)
    b = jax.random.uniform(k2, (cout,), jnp.float32, -bound, bound)
    return w, b


def init_eeg_critic(key, in_channels, out_channels, kernel_size, num_blocks):
    keys = jax.random.split(key, num_blocks + 2)
    return {
        "input": _init_conv(keys[0], out_channels, in_channels, kernel_size),
        "critic": [
            _init_conv(keys[1 + i],
                       out_channels * 2 ** (i + 1),
                       out_channels * 2 ** i,
                       kernel_size)
            for i in range(num_blocks)
        ],
        "output": _init_conv(keys[-1], 1, out_channels * 2 ** num_blocks,
                             kernel_size),
    }


# ---------------------------- pure-JAX reference ----------------------------- #
def _ref_conv(x, w, b, s, p, act):
    y = lax.conv_general_dilated(x, w, (s, s), [(p, p), (p, p)],
                                 dimension_numbers=("NCHW", "OIHW", "NCHW"))
    y = y + b.reshape(1, -1, 1, 1)
    if act:
        y = jnp.where(y >= 0.0, y, NEG_SLOPE * y)
    return y


def eeg_critic_reference(params, x_nchw, stride, padding):
    w, b = params["input"]
    x = _ref_conv(x_nchw, w, b, stride, padding, True)
    for w, b in params["critic"]:
        x = _ref_conv(x, w, b, stride, padding, True)
    w, b = params["output"]
    return _ref_conv(x, w, b, 1, 0, False)


# ---------------------------------- main ------------------------------------ #
if __name__ == "__main__":
    in_channels, out_channels = 4, 8
    kernel_size, stride, padding = 3, 2, 1
    num_blocks, dropout = 2, 0.25  # dropout unused (identity in forward)

    key = jax.random.PRNGKey(0)
    kp, kx = jax.random.split(key)
    params = init_eeg_critic(kp, in_channels, out_channels, kernel_size, num_blocks)

    # x: (N=2, C=4, H=32, W=32) -> 16 -> 8 -> 4 -> output conv -> (2, 1, 2, 2)
    N, H, W = 2, 32, 32
    x = jax.random.normal(kx, (N, in_channels, H, W), jnp.float32)

    # One-time weight packing (outside the hot path).
    packed, cfg = pack_eeg_critic(params, (H, W), stride, padding)

    @jax.jit
    def fwd(packed_params, inp):
        return eeg_critic_forward(packed_params, cfg, inp)

    out = jax.block_until_ready(fwd(packed, x))

    ref = jax.block_until_ready(eeg_critic_reference(params, x, stride, padding))
    assert out.shape == ref.shape == (2, 1, 2, 2), (out.shape, ref.shape)
    max_err = float(jnp.max(jnp.abs(out - ref)))
    # bf16 MXU operands (f32 accumulation) -> loosened tolerance vs f32 reference.
    assert jnp.allclose(out, ref, atol=2e-2, rtol=2e-2), f"mismatch, max err {max_err}"

    print("KERNEL_OK")
</pallas_src>

<mosaic_0001>
module attributes {stable_mosaic.version = 11 : i64} {
  func.func @kernel(%arg0: i32, %arg1: memref<1x40x128xf32, #tpu.memory_space<vmem>>, %arg2: memref<384x128xbf16, #tpu.memory_space<vmem>>, %arg3: memref<1x128xf32, #tpu.memory_space<vmem>>, %arg4: memref<384x128xbf16, #tpu.memory_space<vmem>>, %arg5: memref<1x128xf32, #tpu.memory_space<vmem>>, %arg6: memref<384x128xbf16, #tpu.memory_space<vmem>>, %arg7: memref<1x128xf32, #tpu.memory_space<vmem>>, %arg8: memref<384x2xbf16, #tpu.memory_space<vmem>>, %arg9: memref<1x1xf32, #tpu.memory_space<vmem>>, %arg10: memref<1x2x2xf32, #tpu.memory_space<vmem>>, %arg11: memref<24x128xf32, #tpu.memory_space<vmem>>, %arg12: memref<24x128xf32, #tpu.memory_space<vmem>>) attributes {dimension_semantics = [#tpu.dimension_semantics<parallel>], iteration_bounds = array<i64: 2>, scalar_prefetch = 0 : i64, scratch_operands = 2 : i64, tpu.core_type = #tpu.core_type<tc>, window_params = [{transform_indices = @transform_0, window_bounds = array<i64: 1, 40, 128>}, {pipeline_mode = #tpu.pipeline_mode<synchronous>, transform_indices = @transform_1, window_bounds = array<i64: 384, 128>}, {pipeline_mode = #tpu.pipeline_mode<synchronous>, transform_indices = @transform_2, window_bounds = array<i64: 1, 128>}, {pipeline_mode = #tpu.pipeline_mode<synchronous>, transform_indices = @transform_3, window_bounds = array<i64: 384, 128>}, {pipeline_mode = #tpu.pipeline_mode<synchronous>, transform_indices = @transform_4, window_bounds = array<i64: 1, 128>}, {pipeline_mode = #tpu.pipeline_mode<synchronous>, transform_indices = @transform_5, window_bounds = array<i64: 384, 128>}, {pipeline_mode = #tpu.pipeline_mode<synchronous>, transform_indices = @transform_6, window_bounds = array<i64: 1, 128>}, {pipeline_mode = #tpu.pipeline_mode<synchronous>, transform_indices = @transform_7, window_bounds = array<i64: 384, 2>}, {pipeline_mode = #tpu.pipeline_mode<synchronous>, transform_indices = @transform_8, window_bounds = array<i64: 1, 1>}, {transform_indices = @transform_9, window_bounds = array<i64: 1, 2, 2>}]} {
    %cst = arith.constant 0.000000e+00 : f32
    %0 = vector.broadcast %cst : f32 to vector<1x128xf32>
    %c0 = arith.constant 0 : index
    %c0_0 = arith.constant 0 : index
    %1 = vector.load %arg11[%c0, %c0_0] : memref<24x128xf32, #tpu.memory_space<vmem>>, vector<1x128xf32>
    tpu.vector_store %arg11[%c0, %c0_0], %0 {strides = array<i32>} : memref<24x128xf32, #tpu.memory_space<vmem>>, vector<1x128xf32>,
    %c17 = arith.constant 17 : index
    %c0_1 = arith.constant 0 : index
    %2 = vector.load %arg11[%c17, %c0_1] : memref<24x128xf32, #tpu.memory_space<vmem>>, vector<1x128xf32>
    tpu.vector_store %arg11[%c17, %c0_1], %0 {strides = array<i32>} : memref<24x128xf32, #tpu.memory_space<vmem>>, vector<1x128xf32>,
    %c0_2 = arith.constant 0 : index
    %c0_3 = arith.constant 0 : index
    %c0_4 = arith.constant 0 : index
    %3 = tpu.strided_load %arg1[%c0_2, %c0_3, %c0_4] {strides = array<i32: 1, 2, 1>} : memref<1x40x128xf32, #tpu.memory_space<vmem>>, vector<1x16x128xf32>
    %4 = vector.shape_cast %3 : vector<1x16x128xf32> to vector<16x128xf32>
    %c0_5 = arith.constant 0 : index
    %c1 = arith.constant 1 : index
    %c0_6 = arith.constant 0 : index
    %5 = tpu.strided_load %arg1[%c0_5, %c1, %c0_6] {strides = array<i32: 1, 2, 1>} : memref<1x40x128xf32, #tpu.memory_space<vmem>>, vector<1x16x128xf32>
    %6 = vector.shape_cast %5 : vector<1x16x128xf32> to vector<16x128xf32>
    %c0_7 = arith.constant 0 : index
    %c2 = arith.constant 2 : index
    %c0_8 = arith.constant 0 : index
    %7 = tpu.strided_load %arg1[%c0_7, %c2, %c0_8] {strides = array<i32: 1, 2, 1>} : memref<1x40x128xf32, #tpu.memory_space<vmem>>, vector<1x16x128xf32>
    %8 = vector.shape_cast %7 : vector<1x16x128xf32> to vector<16x128xf32>
    %9 = tpu.concatenate %4, %6, %8 in 1 : vector<16x128xf32>, vector<16x128xf32>, vector<16x128xf32> -> vector<16x384xf32>
    %10 = arith.truncf %9 : vector<16x384xf32> to vector<16x384xbf16>
    %c0_9 = arith.constant 0 : index
    %c0_10 = arith.constant 0 : index
    %11 = vector.load %arg2[%c0_9, %c0_10] : memref<384x128xbf16, #tpu.memory_space<vmem>>, vector<384x128xbf16>
    %cst_11 = arith.constant dense<0.000000e+00> : vector<16x128xf32>
    %12 = tpu.matmul %10, %11, %cst_11 {dimension_numbers = #tpu.dot_dimension_numbers<[1], [0], [0], [1], [0, 0, 1, 1], [], []>} : vector<16x384xbf16>, vector<384x128xbf16>, vector<16x128xf32> -> vector<16x128xf32>
    %c0_12 = arith.constant 0 : index
    %c0_13 = arith.constant 0 : index
    %13 = vector.load %arg3[%c0_12, %c0_13] : memref<1x128xf32, #tpu.memory_space<vmem>>, vector<1x128xf32>
    %14 = vector.broadcast %13 : vector<1x128xf32> to vector<16x128xf32>
    %15 = arith.addf %12, %14 : vector<16x128xf32>
    %cst_14 = arith.constant 0.000000e+00 : f32
    %16 = vector.broadcast %cst_14 : f32 to vector<16x128xf32>
    %17 = arith.cmpf oge, %15, %16 : vector<16x128xf32>
    %cst_15 = arith.constant 2.000000e-01 : f32
    %18 = vector.broadcast %cst_15 : f32 to vector<16x128xf32>
    %19 = arith.mulf %18, %15 : vector<16x128xf32>
    %20 = arith.select %17, %15, %19 : vector<16x128xi1>, vector<16x128xf32>
    %c1_16 = arith.constant 1 : index
    %c0_17 = arith.constant 0 : index
    %21 = vector.load %arg11[%c1_16, %c0_17] : memref<24x128xf32, #tpu.memory_space<vmem>>, vector<16x128xf32>
    tpu.vector_store %arg11[%c1_16, %c0_17], %20 {strides = array<i32>} : memref<24x128xf32, #tpu.memory_space<vmem>>, vector<16x128xf32>,
    %cst_18 = arith.constant 0.000000e+00 : f32
    %22 = vector.broadcast %cst_18 : f32 to vector<1x128xf32>
    %c0_19 = arith.constant 0 : index
    %c0_20 = arith.constant 0 : index
    %23 = vector.load %arg12[%c0_19, %c0_20] : memref<24x128xf32, #tpu.memory_space<vmem>>, vector<1x128xf32>
    tpu.vector_store %arg12[%c0_19, %c0_20], %22 {strides = array<i32>} : memref<24x128xf32, #tpu.memory_space<vmem>>, vector<1x128xf32>,
    %c9 = arith.constant 9 : index
    %c0_21 = arith.constant 0 : index
    %24 = vector.load %arg12[%c9, %c0_21] : memref<24x128xf32, #tpu.memory_space<vmem>>, vector<1x128xf32>
    tpu.vector_store %arg12[%c9, %c0_21], %22 {strides = array<i32>} : memref<24x128xf32, #tpu.memory_space<vmem>>, vector<1x128xf32>,
    %c0_22 = arith.constant 0 : index
    %c0_23 = arith.constant 0 : index
    %25 = tpu.strided_load %arg11[%c0_22, %c0_23] {strides = array<i32: 2, 1>} : memref<24x128xf32, #tpu.memory_space<vmem>>, vector<8x128xf32>
    %c1_24 = arith.constant 1 : index
    %c0_25 = arith.constant 0 : index
    %26 = tpu.strided_load %arg11[%c1_24, %c0_25] {strides = array<i32: 2, 1>} : memref<24x128xf32, #tpu.memory_space<vmem>>, vector<8x128xf32>
    %c2_26 = arith.constant 2 : index
    %c0_27 = arith.constant 0 : index
    %27 = tpu.strided_load %arg11[%c2_26, %c0_27] {strides = array<i32: 2, 1>} : memref<24x128xf32, #tpu.memory_space<vmem>>, vector<8x128xf32>
    %28 = tpu.concatenate %25, %26, %27 in 1 : vector<8x128xf32>, vector<8x128xf32>, vector<8x128xf32> -> vector<8x384xf32>
    %29 = arith.truncf %28 : vector<8x384xf32> to vector<8x384xbf16>
    %c0_28 = arith.constant 0 : index
    %c0_29 = arith.constant 0 : index
    %30 = vector.load %arg4[%c0_28, %c0_29] : memref<384x128xbf16, #tpu.memory_space<vmem>>, vector<384x128xbf16>
    %cst_30 = arith.constant dense<0.000000e+00> : vector<8x128xf32>
    %31 = tpu.matmul %29, %30, %cst_30 {dimension_numbers = #tpu.dot_dimension_numbers<[1], [0], [0], [1], [0, 0, 1, 1], [], []>} : vector<8x384xbf16>, vector<384x128xbf16>, vector<8x128xf32> -> vector<8x128xf32>
    %c0_31 = arith.constant 0 : index
    %c0_32 = arith.constant 0 : index
    %32 = vector.load %arg5[%c0_31, %c0_32] : memref<1x128xf32, #tpu.memory_space<vmem>>, vector<1x128xf32>
    %33 = vector.broadcast %32 : vector<1x128xf32> to vector<8x128xf32>
    %34 = arith.addf %31, %33 : vector<8x128xf32>
    %cst_33 = arith.constant 0.000000e+00 : f32
    %35 = vector.broadcast %cst_33 : f32 to vector<8x128xf32>
    %36 = arith.cmpf oge, %34, %35 : vector<8x128xf32>
    %cst_34 = arith.constant 2.000000e-01 : f32
    %37 = vector.broadcast %cst_34 : f32 to vector<8x128xf32>
    %38 = arith.mulf %37, %34 : vector<8x128xf32>
    %39 = arith.select %36, %34, %38 : vector<8x128xi1>, vector<8x128xf32>
    %c1_35 = arith.constant 1 : index
    %c0_36 = arith.constant 0 : index
    %40 = vector.load %arg12[%c1_35, %c0_36] : memref<24x128xf32, #tpu.memory_space<vmem>>, vector<8x128xf32>
    tpu.vector_store %arg12[%c1_35, %c0_36], %39 {strides = array<i32>} : memref<24x128xf32, #tpu.memory_space<vmem>>, vector<8x128xf32>,
    %c0_37 = arith.constant 0 : index
    %c0_38 = arith.constant 0 : index
    %41 = tpu.strided_load %arg12[%c0_37, %c0_38] {strides = array<i32: 2, 1>} : memref<24x128xf32, #tpu.memory_space<vmem>>, vector<4x128xf32>
    %c1_39 = arith.constant 1 : index
    %c0_40 = arith.constant 0 : index
    %42 = tpu.strided_load %arg12[%c1_39, %c0_40] {strides = array<i32: 2, 1>} : memref<24x128xf32, #tpu.memory_space<vmem>>, vector<4x128xf32>
    %c2_41 = arith.constant 2 : index
    %c0_42 = arith.constant 0 : index
    %43 = tpu.strided_load %arg12[%c2_41, %c0_42] {strides = array<i32: 2, 1>} : memref<24x128xf32, #tpu.memory_space<vmem>>, vector<4x128xf32>
    %44 = tpu.concatenate %41, %42, %43 in 1 : vector<4x128xf32>, vector<4x128xf32>, vector<4x128xf32> -> vector<4x384xf32>
    %45 = arith.truncf %44 : vector<4x384xf32> to vector<4x384xbf16>
    %c0_43 = arith.constant 0 : index
    %c0_44 = arith.constant 0 : index
    %46 = vector.load %arg6[%c0_43, %c0_44] : memref<384x128xbf16, #tpu.memory_space<vmem>>, vector<384x128xbf16>
    %cst_45 = arith.constant dense<0.000000e+00> : vector<4x128xf32>
    %47 = tpu.matmul %45, %46, %cst_45 {dimension_numbers = #tpu.dot_dimension_numbers<[1], [0], [0], [1], [0, 0, 1, 1], [], []>} : vector<4x384xbf16>, vector<384x128xbf16>, vector<4x128xf32> -> vector<4x128xf32>
    %c0_46 = arith.constant 0 : index
    %c0_47 = arith.constant 0 : index
    %48 = vector.load %arg7[%c0_46, %c0_47] : memref<1x128xf32, #tpu.memory_space<vmem>>, vector<1x128xf32>
    %49 = vector.broadcast %48 : vector<1x128xf32> to vector<4x128xf32>
    %50 = arith.addf %47, %49 : vector<4x128xf32>
    %cst_48 = arith.constant 0.000000e+00 : f32
    %51 = vector.broadcast %cst_48 : f32 to vector<4x128xf32>
    %52 = arith.cmpf oge, %50, %51 : vector<4x128xf32>
    %cst_49 = arith.constant 2.000000e-01 : f32
    %53 = vector.broadcast %cst_49 : f32 to vector<4x128xf32>
    %54 = arith.mulf %53, %50 : vector<4x128xf32>
    %55 = arith.select %52, %50, %54 : vector<4x128xi1>, vector<4x128xf32>
    %c0_50 = arith.constant 0 : index
    %c0_51 = arith.constant 0 : index
    %56 = vector.load %arg11[%c0_50, %c0_51] : memref<24x128xf32, #tpu.memory_space<vmem>>, vector<4x128xf32>
    tpu.vector_store %arg11[%c0_50, %c0_51], %55 {strides = array<i32>} : memref<24x128xf32, #tpu.memory_space<vmem>>, vector<4x128xf32>,
    %c0_52 = arith.constant 0 : index
    %c0_53 = arith.constant 0 : index
    %57 = vector.load %arg11[%c0_52, %c0_53] : memref<24x128xf32, #tpu.memory_space<vmem>>, vector<2x128xf32>
    %c1_54 = arith.constant 1 : index
    %c0_55 = arith.constant 0 : index
    %58 = vector.load %arg11[%c1_54, %c0_55] : memref<24x128xf32, #tpu.memory_space<vmem>>, vector<2x128xf32>
    %c2_56 = arith.constant 2 : index
    %c0_57 = arith.constant 0 : index
    %59 = vector.load %arg11[%c2_56, %c0_57] : memref<24x128xf32, #tpu.memory_space<vmem>>, vector<2x128xf32>
    %60 = tpu.concatenate %57, %58, %59 in 1 : vector<2x128xf32>, vector<2x128xf32>, vector<2x128xf32> -> vector<2x384xf32>
    %61 = arith.truncf %60 : vector<2x384xf32> to vector<2x384xbf16>
    %c0_58 = arith.constant 0 : index
    %c0_59 = arith.constant 0 : index
    %62 = vector.load %arg8[%c0_58, %c0_59] : memref<384x2xbf16, #tpu.memory_space<vmem>>, vector<384x2xbf16>
    %cst_60 = arith.constant dense<0.000000e+00> : vector<2x2xf32>
    %63 = tpu.matmul %61, %62, %cst_60 {dimension_numbers = #tpu.dot_dimension_numbers<[1], [0], [0], [1], [0, 0, 1, 1], [], []>} : vector<2x384xbf16>, vector<384x2xbf16>, vector<2x2xf32> -> vector<2x2xf32>
    %c0_61 = arith.constant 0 : index
    %c0_62 = arith.constant 0 : index
    %64 = vector.load %arg9[%c0_61, %c0_62] : memref<1x1xf32, #tpu.memory_space<vmem>>, vector<1x1xf32>
    %65 = vector.broadcast %64 : vector<1x1xf32> to vector<2x2xf32>
    %66 = arith.addf %63, %65 : vector<2x2xf32>
    %c0_63 = arith.constant 0 : index
    %c0_64 = arith.constant 0 : index
    %c0_65 = arith.constant 0 : index
    %67 = vector.load %arg10[%c0_63, %c0_64, %c0_65] : memref<1x2x2xf32, #tpu.memory_space<vmem>>, vector<1x2x2xf32>
    %68 = vector.shape_cast %67 : vector<1x2x2xf32> to vector<2x2xf32>
    %69 = vector.shape_cast %66 : vector<2x2xf32> to vector<1x2x2xf32>
    tpu.vector_store %arg10[%c0_63, %c0_64, %c0_65], %69 {strides = array<i32>} : memref<1x2x2xf32, #tpu.memory_space<vmem>>, vector<1x2x2xf32>,
    return
  }
  func.func @transform_0(%arg0: i32) -> (i32, i32, i32) {
    %c0_i32 = arith.constant 0 : i32
    %c0_i32_0 = arith.constant 0 : i32
    %c0_i32_1 = arith.constant 0 : i32
    return %arg0, %c0_i32, %c0_i32_0 : i32, i32, i32
  }
  func.func @transform_1(%arg0: i32) -> (i32, i32) {
    %c0_i32 = arith.constant 0 : i32
    %c0_i32_0 = arith.constant 0 : i32
    %c0_i32_1 = arith.constant 0 : i32
    return %c0_i32, %c0_i32_0 : i32, i32
  }
  func.func @transform_2(%arg0: i32) -> (i32, i32) {
    %c0_i32 = arith.constant 0 : i32
    %c0_i32_0 = arith.constant 0 : i32
    %c0_i32_1 = arith.constant 0 : i32
    return %c0_i32, %c0_i32_0 : i32, i32
  }
  func.func @transform_3(%arg0: i32) -> (i32, i32) {
    %c0_i32 = arith.constant 0 : i32
    %c0_i32_0 = arith.constant 0 : i32
    %c0_i32_1 = arith.constant 0 : i32
    return %c0_i32, %c0_i32_0 : i32, i32
  }
  func.func @transform_4(%arg0: i32) -> (i32, i32) {
    %c0_i32 = arith.constant 0 : i32
    %c0_i32_0 = arith.constant 0 : i32
    %c0_i32_1 = arith.constant 0 : i32
    return %c0_i32, %c0_i32_0 : i32, i32
  }
  func.func @transform_5(%arg0: i32) -> (i32, i32) {
    %c0_i32 = arith.constant 0 : i32
    %c0_i32_0 = arith.constant 0 : i32
    %c0_i32_1 = arith.constant 0 : i32
    return %c0_i32, %c0_i32_0 : i32, i32
  }
  func.func @transform_6(%arg0: i32) -> (i32, i32) {
    %c0_i32 = arith.constant 0 : i32
    %c0_i32_0 = arith.constant 0 : i32
    %c0_i32_1 = arith.constant 0 : i32
    return %c0_i32, %c0_i32_0 : i32, i32
  }
  func.func @transform_7(%arg0: i32) -> (i32, i32) {
    %c0_i32 = arith.constant 0 : i32
    %c0_i32_0 = arith.constant 0 : i32
    %c0_i32_1 = arith.constant 0 : i32
    return %c0_i32, %c0_i32_0 : i32, i32
  }
  func.func @transform_8(%arg0: i32) -> (i32, i32) {
    %c0_i32 = arith.constant 0 : i32
    %c0_i32_0 = arith.constant 0 : i32
    %c0_i32_1 = arith.constant 0 : i32
    return %c0_i32, %c0_i32_0 : i32, i32
  }
  func.func @transform_9(%arg0: i32) -> (i32, i32, i32) {
    %c0_i32 = arith.constant 0 : i32
    %c0_i32_0 = arith.constant 0 : i32
    %c0_i32_1 = arith.constant 0 : i32
    return %arg0, %c0_i32, %c0_i32_0 : i32, i32, i32
  }
}

</mosaic_0001>

<bundles_post_ra>
// kernel: fwd.1
= control target key start
LH: loop header
LB: loop body
LE: loop exit
PB: predicated region body
PF: predicated region fallthrough
CT: control target
= control target key end

     0   :  { %s2605_s0 = inlined_call_operand.vmem [shape: f32[2,40,128], index: 0, kind: input, shape index: {}]   ;;  %s2606_s1 = inlined_call_operand.vmem [shape: bf16[384,128], index: 1, kind: input, shape index: {}]   ;;  %s2607_s2 = inlined_call_operand.vmem [shape: f32[1,128], index: 2, kind: input, shape index: {}]   ;;  %s2608_s3 = inlined_call_operand.vmem [shape: bf16[384,128], index: 3, kind: input, shape index: {}]   ;;  %s2609_s4 = inlined_call_operand.vmem [shape: f32[1,128], index: 4, kind: input, shape index: {}]   ;;  %s2610_s5 = inlined_call_operand.vmem [shape: bf16[384,128], index: 5, kind: input, shape index: {}]   ;;  %s2611_s6 = inlined_call_operand.vmem [shape: f32[1,128], index: 6, kind: input, shape index: {}]   ;;  %s2612_s7 = inlined_call_operand.vmem [shape: bf16[384,2], index: 7, kind: input, shape index: {}]   ;;  %s2613_s8 = inlined_call_operand.<no memory space> [shape: f32[1,1], index: 8, kind: input, shape index: {}]   ;;  %s2614_s9 = inlined_call_operand.hbm [shape: f32[2,2,2], index: 9, kind: output, shape index: {}]  }
   0x1   :  { %v14_v0 = vstv %s2613_s8 }
   0x2   :  { %15 = vst [vmem:[#allocation4] sm:$0x1] %v14_v0 }
   0x3   :  { %16 = vsyncpa [#allocation6], 0 }
   0x4   :  { %18 = vsyncpa [#allocation6 + $0x1], 0  ;;  %s2166_s11 = smov 0   ;;  %s2168_s12 = smov 0  }
   0x5   :  { %s2170_s13 = smov 0   ;;  %s2172_s14 = smov 0  }
   0x6 LB: > { %s2187_s8 = sadd.s32 4294967295, %s2107_s14   ;;  %s1586_s15 = sadd.s32 4294967294, %s2107_s14   ;;  %s2107_s14 = sphi %s2172_s14, %s2620_s14   ;;  %s2103_s13 = sphi %s2170_s13, %s2619_s13   ;;  %s2099_s12 = sphi %s2168_s12, %s2618_s12   ;;  %s2095_s11 = sphi %s2166_s11, %s2617_s11  }
   0x7   : > { %s2191_s16 = sadd.s32 1, %s2107_s14   ;;  %s225_s17 = sadd.s32 1, %s2103_s13 }
   0x8   : > { %s222_s18 = ssub.s32 %s2107_s14, %s2191_s16  ;;  %p235_p0 = scmp.ne.s32.totalorder %s2103_s13, %s2099_s12 }
   0x9   : > { %p223_p1 = scmp.eq.s32.totalorder %s222_s18, 0  ;;  %p236_p2 = scmp.eq.s32.totalorder %s2187_s8, 1 }
   0xa   : > { %p241_p3 = scmp.ne.s32.totalorder %s2099_s12, %s2095_s11  ;;  %p242_p4 = scmp.eq.s32.totalorder %s1586_s15, 1 }
   0xb   : > { %s2202_s19 = scalar_select %p223_p1, %s2103_s13, %s225_s17  }
   0xc   : > { %p2204_p5 = por %p236_p2, %p235_p0  ;;  %p2208_p6 = por %p242_p4, %p241_p3 }
   0xd   : > { %p1589_p7 = scmp.ge.s32.totalorder %s2107_s14, 1  ;;  %p292_p8 = scmp.lt.s32.totalorder %s2107_s14, 3 }
   0xf   : > { %p293_p9 = pnand %p1589_p7, %p292_p8 }
  0x10   : > { %v1949_v1 = vld [vmem:[%s2606_s1 + $0x40] sm:$0xff] (!%p293_p9)   ;;  %v2109_v3 = vmov (!%p293_p9), 0.0   ;;  %v1952_v5 = vld [vmem:[%s2606_s1 + $0x48] sm:$0xff] (!%p293_p9)   ;;  %vm2110_vm0 = vmmov (!%p293_p9), 0   ;;  %v1955_v8 = vld [vmem:[%s2606_s1 + $0x50] sm:$0xff] (!%p293_p9)   ;;  %p328_p10 = scmp.lt.s32.totalorder (!%p293_p9), %s2187_s8, 1 }
  0x11   : > { %296 = sbr.rel (%p293_p9) target bundleno = 983 (0x3d7), region = 56  ;;  %v1950_v2 = vld [vmem:[%s2606_s1] sm:$0xff] (!%p293_p9)   ;;  %1825 = vmatprep.subr.bf16.mxu1 (!%p293_p9), %v2109_v3  ;;  %334 = vst [vmem:[#allocation2] sm:$0x1] (!%p293_p9), %v2109_v3  ;;  %639 = vst [vmem:[#allocation3] sm:$0x1] (!%p293_p9), %v2109_v3  ;;  %1701 = vmatprep.subr.bf16.mxu0 (!%p293_p9), %v1949_v1 }
  0x12   : > { %v1951_v4 = vld [vmem:[%s2606_s1 + $0x80] sm:$0xff] (!%p293_p9)   ;;  %1702 = vmatpush3.bf16.msra.mxu0 (!%p293_p9), %v1950_v2  ;;  %1841 = vmatprep.mubr.msk.bf16.mxu1 (!%p293_p9), %vm2110_vm0, %v2109_v3  ;;  %v1953_v6 = vld [vmem:[%s2606_s1 + $0x8] sm:$0xff] (!%p293_p9)   ;;  %v1956_v9 = vld [vmem:[%s2606_s1 + $0x10] sm:$0xff] (!%p293_p9)   ;;  %s325_s10 = sand.u32 (!%p293_p9), 1, %s2099_s12   ;;  %vm1511_vm5 = vcmask (!%p293_p9), 9216  }
  0x13   : > { %1826 = vmatpush3.bf16.msra.mxu1 (!%p293_p9), %v1951_v4  ;;  %1703 = vmatprep.subr.bf16.mxu0 (!%p293_p9), %v1952_v5  ;;  %v1954_v7 = vld [vmem:[%s2606_s1 + $0x88] sm:$0xff] (!%p293_p9)   ;;  %v1957_v10 = vld [vmem:[%s2606_s1 + $0x90] sm:$0xff] (!%p293_p9)   ;;  %v1958_v11 = vld [vmem:[%s2606_s1 + $0x58] sm:$0xff] (!%p293_p9)   ;;  %s1590_s15 = sshll.u32 (!%p293_p9), %s325_s10, 1  ;;  %s1514_s26 = scalar_lea.sflag (!%p293_p9), [#allocation6], %s325_s10 }
  0x14   : > { %1827 = vmatprep.subr.bf16.mxu1 (!%p293_p9), %v2109_v3  ;;  %v1959_v12 = vld [vmem:[%s2606_s1 + $0x18] sm:$0xff] (!%p293_p9)   ;;  %v1961_v14 = vld [vmem:[%s2606_s1 + $0x60] sm:$0xff] (!%p293_p9)   ;;  %v1964_v17 = vld [vmem:[%s2606_s1 + $0x68] sm:$0xff] (!%p293_p9)   ;;  %s327_s17 = scalar_lea.vmem (!%p293_p9), [#allocation5], %s1590_s15 }
  0x15   : > { %v1960_v13 = vld [vmem:[%s2606_s1 + $0x98] sm:$0xff] (!%p293_p9)   ;;  %v1962_v15 = vld [vmem:[%s2606_s1 + $0x20] sm:$0xff] (!%p293_p9)   ;;  %v1965_v18 = vld [vmem:[%s2606_s1 + $0x28] sm:$0xff] (!%p293_p9)   ;;  %s1527_s18 = sshll.u32 (!%p293_p9), %s327_s17, 4  ;;  %s2565_s18 = int_to_ptr.vmem [resolvable:$true] %s1527_s18 }
  0x16   : > { %1704 = vmatpush3.bf16.msra.mxu0 (!%p293_p9), %v1953_v6  ;;  %v1963_v16 = vld [vmem:[%s2606_s1 + $0xa0] sm:$0xff] (!%p293_p9)   ;;  %v1966_v19 = vld [vmem:[%s2606_s1 + $0xa8] sm:$0xff] (!%p293_p9)   ;;  %v1967_v20 = vld [vmem:[%s2606_s1 + $0x70] sm:$0xff] (!%p293_p9)   ;;  %s2045_s27 = scalar_lea.vmem (!%p293_p9), %s2565_s18, 32 }
  0x17   : > { %1828 = vmatpush3.bf16.msra.mxu1 (!%p293_p9), %v1954_v7  ;;  %1705 = vmatprep.subr.bf16.mxu0 (!%p293_p9), %v1955_v8  ;;  %v1968_v21 = vld [vmem:[%s2606_s1 + $0x30] sm:$0xff] (!%p293_p9)   ;;  %v1970_v25 = vld [vmem:[%s2606_s1 + $0x78] sm:$0xff] (!%p293_p9)   ;;  %v1973_v33 = vld [vmem:[%s2608_s3 + $0x40] sm:$0xff] (!%p293_p9)   ;;  %p2046_p11 = scmp.ne.s32.totalorder (!%p293_p9), %s2565_s18, %s2045_s27 }
  0x18   : > { %1829 = vmatprep.subr.bf16.mxu1 %v2109_v3  ;;  %s329_s22 = scalar_select %p328_p10, %s2187_s8, 1  ;;  %v1969_v24 = vld [vmem:[%s2606_s1 + $0xb0] sm:$0xff]   ;;  %v1971_v27 = vld [vmem:[%s2606_s1 + $0x38] sm:$0xff]   ;;  %v1974_v35 = vld [vmem:[%s2608_s3 + $0x80] sm:$0xff]  }
  0x19   : > { %v1972_v30 = vld [vmem:[%s2606_s1 + $0xb8] sm:$0xff]   ;;  %v1975_v36 = vld [vmem:[%s2608_s3] sm:$0xff]   ;;  %v1976_v38 = vld [vmem:[%s2608_s3 + $0x48] sm:$0xff]   ;;  %p2047_p12 = pnand %p2046_p11, %p2204_p5 }
  0x1a   : > { %1706 = vmatpush3.bf16.msra.mxu0 %v1956_v9  ;;  %s1905_s29 = smul.u32 40, %s329_s22  ;;  %v1978_v39 = vld [vmem:[%s2608_s3 + $0x8] sm:$0xff]   ;;  %v1979_v41 = vld [vmem:[%s2608_s3 + $0x50] sm:$0xff]   ;;  %v1982_v44 = vld [vmem:[%s2608_s3 + $0x58] sm:$0xff]  }
  0x1b   : > { %1830 = vmatpush3.bf16.msra.mxu1 %v1957_v10  ;;  %1707 = vmatprep.subr.bf16.mxu0 %v1958_v11  ;;  %v1977_v40 = vld [vmem:[%s2608_s3 + $0x88] sm:$0xff]   ;;  %v1980_v42 = vld [vmem:[%s2608_s3 + $0x90] sm:$0xff]   ;;  %v1983_v45 = vld [vmem:[%s2608_s3 + $0x98] sm:$0xff]   ;;  %p2048_p13 = pneg %p2047_p12 }
  0x1c   : > { %1831 = vmatprep.subr.bf16.mxu1 %v2109_v3  ;;  %s332_s22 = scalar_lea.vmem %s2605_s0, %s1905_s29  ;;  %v1981_v43 = vld [vmem:[%s2608_s3 + $0x10] sm:$0xff]   ;;  %v1984_v46 = vld [vmem:[%s2608_s3 + $0x18] sm:$0xff]   ;;  %v1985_v47 = vld [vmem:[%s2608_s3 + $0x60] sm:$0xff]   ;;  %s1698_s29 = sshll.u32 %s2187_s8, 5 }
  0x1d   : > { %v1593_v22 = vld [vmem:[%s332_s22 + $0x1] ss:$2 sm:$0xff]  ;;  %v1594_v23 = vld [vmem:[%s332_s22 + $0x11] ss:$2 sm:$0xff]  ;;  %v336_v28 = vld [vmem:[%s332_s22] ss:$2 sm:$0xff]  ;;  %s2563_s25 = scalar_lea.hbm %s2614_s9, %s1698_s29 }
  0x1e   : > { %1708 = vmatpush3.bf16.msra.mxu0 %v1959_v12  ;;  %v348_v26 = vpack.c.bf16 %v1594_v23, %v1593_v22  ;;  %v1592_v29 = vld [vmem:[%s332_s22 + $0x10] ss:$2 sm:$0xff]  ;;  %v1986_v48 = vld [vmem:[%s2608_s3 + $0xa0] sm:$0xff]   ;;  %v1988_v50 = vld [vmem:[%s2608_s3 + $0x68] sm:$0xff]   ;;  %s2112_s8 = smov [#allocation5]  }
  0x1f   : > { %1832 = vmatpush3.bf16.msra.mxu1 %v1960_v13  ;;  %1709 = vmatprep.subr.bf16.mxu0 %v1961_v14  ;;  %v1595_v31 = vld [vmem:[%s332_s22 + $0x2] ss:$2 sm:$0xff]  ;;  %v1596_v32 = vld [vmem:[%s332_s22 + $0x12] ss:$2 sm:$0xff]  ;;  %v347_v34 = vpack.c.bf16 %v1592_v29, %v336_v28  ;;  %s2049_s28 = sshll.u32 %s2112_s8, 4  ;;  %s2050_s28 = int_to_ptr.vmem [resolvable:$false] %s2049_s28 }
  0x20   : > { %1833 = vmatprep.subr.bf16.mxu1 %v2109_v3  ;;  %581 = vmatprep.mubr.bf16.mxu0 %v348_v26  ;;  %v349_v37 = vpack.c.bf16 %v1596_v32, %v1595_v31  ;;  %v1987_v49 = vld [vmem:[%s2608_s3 + $0x20] sm:$0xff]   ;;  %v1989_v51 = vld [vmem:[%s2608_s3 + $0xa8] sm:$0xff]   ;;  %v1991_v53 = vld [vmem:[%s2608_s3 + $0x70] sm:$0xff]   ;;  %s2051_s30 = scalar_lea.vmem %s2050_s28, 64  ;;  %p2052_p0 = scmp.lt.s32.totalorder %s2565_s18, %s2050_s28 }
  0x21   : > { %v1990_v52 = vld [vmem:[%s2608_s3 + $0x28] sm:$0xff]   ;;  %v1992_v54 = vld [vmem:[%s2608_s3 + $0xb0] sm:$0xff]   ;;  %v1994_v56 = vld [vmem:[%s2608_s3 + $0x78] sm:$0xff]   ;;  %p2053_p1 = scmp.lt.s32.totalorder %s2051_s30, %s2045_s27 }
  0x22   : > { %1710 = vmatpush3.bf16.msra.mxu0 %v1962_v15  ;;  %v1993_v55 = vld [vmem:[%s2608_s3 + $0x30] sm:$0xff]   ;;  %v1995_v57 = vld [vmem:[%s2608_s3 + $0xb8] sm:$0xff]   ;;  %v1997_v59 = vld [vmem:[%s2610_s5 + $0x40] sm:$0xff]  }
  0x23   : > { %1834 = vmatpush3.bf16.msra.mxu1 %v1963_v16  ;;  %1711 = vmatprep.subr.bf16.mxu0 %v1964_v17  ;;  %v1996_v58 = vld [vmem:[%s2608_s3 + $0x38] sm:$0xff]   ;;  %v1597_v62 = vld [vmem:[%s2607_s2] ss:$0 sm:$0xff]  ;;  %v2002_v26 = vld [vmem:[%s2610_s5 + $0x8] sm:$0xff]   ;;  %p2054_p2 = por %p2053_p1, %p2052_p0 }
  0x24   : > { %1835 = vmatprep.subr.bf16.mxu1 %v2109_v3  ;;  %v1998_v16 = vld [vmem:[%s2610_s5 + $0x80] sm:$0xff]   ;;  %v2004_v28 = vld [vmem:[%s2610_s5 + $0x90] sm:$0xff]   ;;  %v2007_v31 = vld [vmem:[%s2610_s5 + $0x98] sm:$0xff]  }
  0x25   : > { %v1999_v23 = vld [vmem:[%s2610_s5] sm:$0xff]   ;;  %v2005_v29 = vld [vmem:[%s2610_s5 + $0x10] sm:$0xff]   ;;  %v2008_v32 = vld [vmem:[%s2610_s5 + $0x18] sm:$0xff]   ;;  %p2055_p3 = pnand %p2054_p2, %p2048_p13 }
  0x26   : > { %1712 = vmatpush3.bf16.msra.mxu0 %v1965_v18 }
  0x27   : > { %1836 = vmatpush3.bf16.msra.mxu1 %v1966_v19  ;;  %1713 = vmatprep.subr.bf16.mxu0 %v1967_v20 }
  0x28   : > { %1837 = vmatprep.subr.bf16.mxu1 %v2109_v3 }
  0x2a   : > { %1714 = vmatpush3.bf16.msra.mxu0 %v1968_v21 }
  0x2b   : > { %1838 = vmatpush3.bf16.msra.mxu1 %v1969_v24  ;;  %1715 = vmatprep.subr.bf16.mxu0 %v1970_v25  ;;  %v2000_v24 = vld [vmem:[%s2610_s5 + $0x48] sm:$0xff]  }
  0x2c   : > { %1839 = vmatprep.subr.bf16.mxu1 %v2109_v3  ;;  %v2001_v25 = vld [vmem:[%s2610_s5 + $0x88] sm:$0xff]  }
  0x2e   : > { %1716 = vmatpush3.bf16.msra.mxu0 %v1971_v27  ;;  %v2003_v27 = vld [vmem:[%s2610_s5 + $0x50] sm:$0xff]  }
  0x2f   : > { %1840 = vmatpush3.bf16.msra.mxu1 %v1972_v30  ;;  %1732 = vmatprep.subr.bf16.mxu0 %v1973_v33  ;;  %v2006_v30 = vld [vmem:[%s2610_s5 + $0x58] sm:$0xff]   ;;  %v2009_v33 = vld [vmem:[%s2610_s5 + $0x60] sm:$0xff]  }
  0x30   : > { %1845 = vmatprep.subr.bf16.mxu1 %v2109_v3 }
  0x31   : > { %582 = vmatmul.mubr.bf16.vlgmr.msra.gmra.mrb[0].mxu0 %v347_v34  ;;  %v2010_v34 = vld [vmem:[%s2610_s5 + $0xa0] sm:$0xff]  }
  0x32   : > { %1842 = vmatmul.mubr.bf16.vlgmr.msra.gmra.mrb[0].mxu1 %v349_v37  ;;  %1733 = vmatpush3.bf16.msra.mxu0 %v1975_v36  ;;  %v2012_v36 = vld [vmem:[%s2610_s5 + $0x68] sm:$0xff]  }
  0x33   : > { %1846 = vmatpush3.bf16.msra.mxu1 %v1974_v35  ;;  %1734 = vmatprep.subr.bf16.mxu0 %v1976_v38  ;;  %v2011_v35 = vld [vmem:[%s2610_s5 + $0x20] sm:$0xff]   ;;  %v2013_v37 = vld [vmem:[%s2610_s5 + $0xa8] sm:$0xff]  }
  0x34   : > { %1847 = vmatprep.subr.bf16.mxu1 %v2109_v3  ;;  %1861 = vmatprep.mubr.msk.bf16.mxu1 %vm2110_vm0, %v2109_v3  ;;  %v2014_v38 = vld [vmem:[%s2610_s5 + $0x28] sm:$0xff]  }
  0x36   : > { %1735 = vmatpush3.bf16.msra.mxu0 %v1978_v39  ;;  %v2015_v39 = vld [vmem:[%s2610_s5 + $0x70] sm:$0xff]  }
  0x37   : > { %1848 = vmatpush3.bf16.msra.mxu1 %v1977_v40  ;;  %1736 = vmatprep.subr.bf16.mxu0 %v1979_v41  ;;  %v2016_v40 = vld [vmem:[%s2610_s5 + $0xb0] sm:$0xff]  }
  0x38   : > { %1849 = vmatprep.subr.bf16.mxu1 %v2109_v3  ;;  %v2017_v41 = vld [vmem:[%s2610_s5 + $0x30] sm:$0xff]  }
  0x3a   : > { %1737 = vmatpush3.bf16.msra.mxu0 %v1981_v43  ;;  %v2019_v43 = vld [vmem:[%s2610_s5 + $0xb8] sm:$0xff]  }
  0x3b   : > { %1850 = vmatpush3.bf16.msra.mxu1 %v1980_v42  ;;  %1738 = vmatprep.subr.bf16.mxu0 %v1982_v44  ;;  %v2018_v42 = vld [vmem:[%s2610_s5 + $0x78] sm:$0xff]  }
  0x3c   : > { %1851 = vmatprep.subr.bf16.mxu1 %v2109_v3  ;;  %v2020_v44 = vld [vmem:[%s2610_s5 + $0x38] sm:$0xff]  }
  0x3e   : > { %1739 = vmatpush3.bf16.msra.mxu0 %v1984_v46 }
  0x3f   : > { %1852 = vmatpush3.bf16.msra.mxu1 %v1983_v45  ;;  %1740 = vmatprep.subr.bf16.mxu0 %v1985_v47  ;;  %v2021_v45 = vld [vmem:[%s2612_s7 + $0x40] sm:$0xff]  }
  0x40   : > { %1853 = vmatprep.subr.bf16.mxu1 %v2109_v3 }
  0x42   : > { %1741 = vmatpush3.bf16.msra.mxu0 %v1987_v49  ;;  %v1622_v49 = vld [vmem:[%s2609_s4] ss:$0 sm:$0xff] }
  0x43   : > { %1854 = vmatpush3.bf16.msra.mxu1 %v1986_v48  ;;  %1742 = vmatprep.subr.bf16.mxu0 %v1988_v50 }
  0x44   : > { %1855 = vmatprep.subr.bf16.mxu1 %v2109_v3 }
  0x46   : > { %1743 = vmatpush3.bf16.msra.mxu0 %v1990_v52 }
  0x47   : > { %1856 = vmatpush3.bf16.msra.mxu1 %v1989_v51  ;;  %1744 = vmatprep.subr.bf16.mxu0 %v1991_v53 }
  0x48   : > { %1857 = vmatprep.subr.bf16.mxu1 %v2109_v3 }
  0x4a   : > { %1745 = vmatpush3.bf16.msra.mxu0 %v1993_v55 }
  0x4b   : > { %1858 = vmatpush3.bf16.msra.mxu1 %v1992_v54  ;;  %1746 = vmatprep.subr.bf16.mxu0 %v1994_v56 }
  0x4c   : > { %1859 = vmatprep.subr.bf16.mxu1 %v2109_v3 }
  0x4e   : > { %1747 = vmatpush3.bf16.msra.mxu0 %v1996_v58 }
  0x4f   : > { %1860 = vmatpush3.bf16.msra.mxu1 %v1995_v57  ;;  %1763 = vmatprep.subr.bf16.mxu0 %v1997_v59 }
  0x50   : > { %1865 = vmatprep.subr.bf16.mxu1 %v2109_v3 }
 0x104   : > { %v1717_v60 = vpop.f32.mrb[0].mxu0 }
 0x105   : > { %v1718_v61 = vpop.f32.mrb[1].mxu0  ;;  %v624_v63 = vpop.f32.mrb[0].mxu1 }
 0x106   : > { %v1719_v0 = vadd.f32 %v1718_v61, %v1717_v60  ;;  %v1720_v1 = vpop.f32.mrb[2].mxu0  ;;  %v1843_v2 = vpop.f32.mrb[1].mxu1  ;;  %v2022_v60 = vld [vmem:[%s2612_s7 + $0x80] sm:$0xff]  }
 0x107   : > { %v1721_v4 = vpop.f32.mrb[3].mxu0  ;;  %v627_v5 = vpop.f32.mrb[2].mxu1  ;;  %v2023_v2 = vld [vmem:[%s2612_s7] sm:$0xff]  }
 0x108   : > { %v584_v6 = vadd.f32 %v1719_v0, %v1597_v62  ;;  %v1722_v7 = vadd.f32 %v1721_v4, %v1720_v1  ;;  %v1844_v8 = vpop.f32.mrb[3].mxu1 }
 0x109   : > { %v2027_v8 = vld [vmem:[%s2612_s7 + $0x50] sm:$0xff]  }
 0x10a   : > { %v625_v9 = vadd.f32 %v624_v63, %v584_v6  ;;  %v587_v10 = vadd.f32 %v1722_v7, %v1597_v62  ;;  %v2025_v6 = vld [vmem:[%s2612_s7 + $0x88] sm:$0xff]  }
 0x10b   : > { %v2026_v7 = vld [vmem:[%s2612_s7 + $0x8] sm:$0xff]  }
 0x10c   : > { %vm631_vm1 = vcmp.ge.f32.partialorder %v625_v9, 0.0  ;;  %v633_v11 = vmul.f32 0.2, %v625_v9  ;;  %v628_v12 = vadd.f32 %v627_v5, %v587_v10  ;;  %v2024_v5 = vld [vmem:[%s2612_s7 + $0x48] sm:$0xff]   ;;  %v2029_v10 = vld [vmem:[%s2612_s7 + $0x10] sm:$0xff]  }
 0x10e   : > { %v635_v13 = vsel %vm631_vm1, %v625_v9, %v633_v11  ;;  %vm632_vm2 = vcmp.ge.f32.partialorder %v628_v12, 0.0  ;;  %v634_v14 = vmul.f32 0.2, %v628_v12  ;;  %v2028_v9 = vld [vmem:[%s2612_s7 + $0x90] sm:$0xff]   ;;  %v2030_v11 = vld [vmem:[%s2612_s7 + $0x58] sm:$0xff]  }
 0x10f   : > { %637 = vst [vmem:[#allocation2 + $0x1] sm:$0xff] %v635_v13  ;;  %v2032_v13 = vld [vmem:[%s2612_s7 + $0x18] sm:$0xff]  }
 0x110   : > { %v636_v15 = vsel %vm632_vm2, %v628_v12, %v634_v14  ;;  %v2031_v12 = vld [vmem:[%s2612_s7 + $0x98] sm:$0xff]   ;;  %v2033_v14 = vld [vmem:[%s2612_s7 + $0x60] sm:$0xff]  }
 0x111   : > { %638 = vst [vmem:[#allocation2 + $0x9] sm:$0xff] %v636_v15  ;;  %v2034_v15 = vld [vmem:[%s2612_s7 + $0xa0] sm:$0xff]  }
 0x118   : > { %v643_v17 = vld [vmem:[#allocation2 + $0x1] ss:$2 sm:$0xff]  ;;  %v645_v18 = vld [vmem:[#allocation2 + $0x2] ss:$2 sm:$0xff] }
 0x119   : > { %v641_v19 = vld [vmem:[#allocation2] ss:$2 sm:$0xff]  ;;  %v647_v20 = vpack.c.bf16 %v643_v17, %v643_v17  ;;  %v648_v21 = vpack.c.bf16 %v645_v18, %v645_v18 }
 0x11a   : > { %v646_v22 = vpack.c.bf16 %v641_v19, %v641_v19  ;;  %v2036_v17 = vld [vmem:[%s2612_s7 + $0x68] sm:$0xff]  }
 0x11b   : > { %880 = vmatprep.mubr.bf16.mxu0 %v647_v20  ;;  %1862 = vmatmul.mubr.bf16.vlgmr.msra.gmra.mrb[4].mxu1 %v648_v21  ;;  %v2037_v18 = vld [vmem:[%s2612_s7 + $0xa8] sm:$0xff]   ;;  %v2039_v20 = vld [vmem:[%s2612_s7 + $0x70] sm:$0xff]  }
 0x11c   : > { %881 = vmatmul.mubr.bf16.vlgmr.msra.gmra.mrb[4].mxu0 %v646_v22  ;;  %1866 = vmatpush3.bf16.msra.mxu1 %v1998_v16  ;;  %v2035_v16 = vld [vmem:[%s2612_s7 + $0x20] sm:$0xff]   ;;  %v2038_v19 = vld [vmem:[%s2612_s7 + $0x28] sm:$0xff]   ;;  %v2040_v21 = vld [vmem:[%s2612_s7 + $0xb0] sm:$0xff]  }
 0x11d   : > { %1764 = vmatpush3.bf16.msra.mxu0 %v1999_v23  ;;  %1867 = vmatprep.subr.bf16.mxu1 %v2109_v3  ;;  %v2041_v22 = vld [vmem:[%s2612_s7 + $0x30] sm:$0xff]   ;;  %v2042_v23 = vld [vmem:[%s2612_s7 + $0x78] sm:$0xff]  }
 0x11e   : > { %1765 = vmatprep.subr.bf16.mxu0 %v2000_v24  ;;  %1881 = vmatprep.mubr.msk.bf16.mxu1 %vm2110_vm0, %v2109_v3  ;;  %v2043_v24 = vld [vmem:[%s2612_s7 + $0xb8] sm:$0xff]  }
 0x120   : > { %1868 = vmatpush3.bf16.msra.mxu1 %v2001_v25  ;;  %v2044_v25 = vld [vmem:[%s2612_s7 + $0x38] sm:$0xff]  }
 0x121   : > { %1766 = vmatpush3.bf16.msra.mxu0 %v2002_v26  ;;  %1869 = vmatprep.subr.bf16.mxu1 %v2109_v3  ;;  %v1672_v26 = vld [vmem:[#allocation4] ss:$0 sm:$0xff] }
 0x122   : > { %1767 = vmatprep.subr.bf16.mxu0 %v2003_v27  ;;  %v2111_v27 = vmov 0  }
 0x123   : > { %1948 = vset.pattern.permute.xlu0 %v2111_v27 }
 0x124   : > { %1870 = vmatpush3.bf16.msra.mxu1 %v2004_v28  ;;  %1284 = vperm.xlu0 %1948, %v1672_v26  }
 0x125   : > { %1871 = vmatprep.subr.bf16.mxu1 %v2109_v3  ;;  %1768 = vmatpush3.bf16.msra.mxu0 %v2005_v29 }
 0x126   : > { %1769 = vmatprep.subr.bf16.mxu0 %v2006_v30 }
 0x128   : > { %1872 = vmatpush3.bf16.msra.mxu1 %v2007_v31  ;;  %v1647_v31 = vld [vmem:[%s2611_s6] ss:$0 sm:$0xff] }
 0x129   : > { %1770 = vmatpush3.bf16.msra.mxu0 %v2008_v32  ;;  %1873 = vmatprep.subr.bf16.mxu1 %v2109_v3 }
 0x12a   : > { %1771 = vmatprep.subr.bf16.mxu0 %v2009_v33 }
 0x12c   : > { %1874 = vmatpush3.bf16.msra.mxu1 %v2010_v34 }
 0x12d   : > { %1772 = vmatpush3.bf16.msra.mxu0 %v2011_v35  ;;  %1875 = vmatprep.subr.bf16.mxu1 %v2109_v3 }
 0x12e   : > { %1773 = vmatprep.subr.bf16.mxu0 %v2012_v36 }
 0x130   : > { %1876 = vmatpush3.bf16.msra.mxu1 %v2013_v37 }
 0x131   : > { %1774 = vmatpush3.bf16.msra.mxu0 %v2014_v38  ;;  %1877 = vmatprep.subr.bf16.mxu1 %v2109_v3 }
 0x132   : > { %1775 = vmatprep.subr.bf16.mxu0 %v2015_v39 }
 0x134   : > { %1878 = vmatpush3.bf16.msra.mxu1 %v2016_v40 }
 0x135   : > { %1776 = vmatpush3.bf16.msra.mxu0 %v2017_v41  ;;  %1879 = vmatprep.subr.bf16.mxu1 %v2109_v3 }
 0x136   : > { %1777 = vmatprep.subr.bf16.mxu0 %v2018_v42 }
 0x138   : > { %1880 = vmatpush3.bf16.msra.mxu1 %v2019_v43 }
 0x139   : > { %1778 = vmatpush3.bf16.msra.mxu0 %v2020_v44  ;;  %1885 = vmatprep.subr.bf16.mxu1 %v2109_v3 }
 0x13a   : > { %1794 = vmatprep.subr.bf16.mxu0 %v2021_v45 }
 0x1ee   : > { %v922_v46 = vpop.f32.mrb[4].mxu1 }
 0x1ef   : > { %v1748_v47 = vpop.f32.mrb[4].mxu0  ;;  %v1863_v48 = vpop.f32.mrb[5].mxu1 }
 0x1f0   : > { %v1749_v50 = vpop.f32.mrb[5].mxu0  ;;  %v925_v51 = vpop.f32.mrb[6].mxu1 }
 0x1f1   : > { %v1750_v52 = vadd.f32 %v1749_v50, %v1748_v47  ;;  %v1751_v53 = vpop.f32.mrb[6].mxu0  ;;  %v1864_v54 = vpop.f32.mrb[7].mxu1 }
 0x1f2   : > { %v1752_v55 = vpop.f32.mrb[7].mxu0  ;;  %v1285_v48 = vpop.permute.xlu0 %1284 }
 0x1f3   : > { %v883_v56 = vadd.f32 %v1750_v52, %v1622_v49 }
 0x1f5   : > { %v923_v57 = vadd.f32 %v922_v46, %v883_v56 }
 0x1f7   : > { %vm928_vm3 = vcmp.ge.f32.partialorder %v923_v57, 0.0  ;;  %v929_v58 = vmul.f32 0.2, %v923_v57 }
 0x1f9   : > { %v930_v59 = vsel %vm928_vm3, %v923_v57, %v929_v58 }
 0x1fa   : > { %931 = vst [vmem:[#allocation3 + $0x1] sm:$0xff] %v930_v59 }
 0x201   : > { %v934_v61 = vld [vmem:[#allocation3 + $0x1] ss:$2 sm:$0xf]  ;;  %v936_v62 = vld [vmem:[#allocation3 + $0x2] ss:$2 sm:$0xf] }
 0x202   : > { %v938_v63 = vpack.c.bf16 %v934_v61, %v934_v61  ;;  %v939_v0 = vpack.c.bf16 %v936_v62, %v936_v62  ;;  %v932_v1 = vld [vmem:[#allocation3] ss:$2 sm:$0xf] }
 0x203   : > { %v937_v4 = vpack.c.bf16 %v932_v1, %v932_v1 }
 0x204   : > { %1171 = vmatprep.mubr.bf16.mxu0 %v938_v63  ;;  %1882 = vmatmul.mubr.bf16.vlgmr.msra.gmra.mrb[8].mxu1 %v939_v0 }
 0x205   : > { %1172 = vmatmul.mubr.bf16.vlgmr.msra.gmra.mrb[8].mxu0 %v937_v4  ;;  %1886 = vmatpush3.bf16.msra.mxu1 %v2022_v60 }
 0x206   : > { %1795 = vmatpush3.bf16.msra.mxu0 %v2023_v2  ;;  %1887 = vmatprep.subr.bf16.mxu1 %v2109_v3 }
 0x207   : > { %1796 = vmatprep.subr.bf16.mxu0 %v2024_v5  ;;  %1901 = vmatprep.mubr.msk.bf16.mxu1 %vm2110_vm0, %v2109_v3 }
 0x209   : > { %1888 = vmatpush3.bf16.msra.mxu1 %v2025_v6 }
 0x20a   : > { %1797 = vmatpush3.bf16.msra.mxu0 %v2026_v7  ;;  %1889 = vmatprep.subr.bf16.mxu1 %v2109_v3 }
 0x20b   : > { %1798 = vmatprep.subr.bf16.mxu0 %v2027_v8 }
 0x20d   : > { %1890 = vmatpush3.bf16.msra.mxu1 %v2028_v9 }
 0x20e   : > { %1891 = vmatprep.subr.bf16.mxu1 %v2109_v3  ;;  %1799 = vmatpush3.bf16.msra.mxu0 %v2029_v10 }
 0x20f   : > { %1800 = vmatprep.subr.bf16.mxu0 %v2030_v11 }
 0x211   : > { %1892 = vmatpush3.bf16.msra.mxu1 %v2031_v12 }
 0x212   : > { %1801 = vmatpush3.bf16.msra.mxu0 %v2032_v13  ;;  %1893 = vmatprep.subr.bf16.mxu1 %v2109_v3 }
 0x213   : > { %1802 = vmatprep.subr.bf16.mxu0 %v2033_v14 }
 0x215   : > { %1894 = vmatpush3.bf16.msra.mxu1 %v2034_v15 }
 0x216   : > { %1803 = vmatpush3.bf16.msra.mxu0 %v2035_v16  ;;  %1895 = vmatprep.subr.bf16.mxu1 %v2109_v3 }
 0x217   : > { %1804 = vmatprep.subr.bf16.mxu0 %v2036_v17 }
 0x219   : > { %1896 = vmatpush3.bf16.msra.mxu1 %v2037_v18 }
 0x21a   : > { %1805 = vmatpush3.bf16.msra.mxu0 %v2038_v19  ;;  %1897 = vmatprep.subr.bf16.mxu1 %v2109_v3 }
 0x21b   : > { %1806 = vmatprep.subr.bf16.mxu0 %v2039_v20 }
 0x21d   : > { %1898 = vmatpush3.bf16.msra.mxu1 %v2040_v21 }
 0x21e   : > { %1807 = vmatpush3.bf16.msra.mxu0 %v2041_v22  ;;  %1899 = vmatprep.subr.bf16.mxu1 %v2109_v3 }
 0x21f   : > { %1808 = vmatprep.subr.bf16.mxu0 %v2042_v23 }
 0x221   : > { %1900 = vmatpush3.bf16.msra.mxu1 %v2043_v24 }
 0x222   : > { %1809 = vmatpush3.bf16.msra.mxu0 %v2044_v25 }
 0x2d7   : > { %v1213_v28 = vpop.f32.mrb[8].mxu1 }
 0x2d8   : > { %v1779_v29 = vpop.f32.mrb[8].mxu0  ;;  %v1883_v30 = vpop.f32.mrb[9].mxu1 }
 0x2d9   : > { %v1780_v32 = vpop.f32.mrb[9].mxu0  ;;  %v1216_v3 = vpop.f32.mrb[10].mxu1 }
 0x2da   : > { %v1781_v33 = vadd.f32 %v1780_v32, %v1779_v29  ;;  %v1782_v34 = vpop.f32.mrb[10].mxu0  ;;  %v1884_v35 = vpop.f32.mrb[11].mxu1 }
 0x2db   : > { %v1783_v36 = vpop.f32.mrb[11].mxu0 }
 0x2dc   : > { %v1174_v37 = vadd.f32 %v1781_v33, %v1647_v31 }
 0x2de   : > { %v1214_v38 = vadd.f32 %v1213_v28, %v1174_v37 }
 0x2e0   : > { %vm1219_vm4 = vcmp.ge.f32.partialorder %v1214_v38, 0.0  ;;  %v1220_v39 = vmul.f32 0.2, %v1214_v38 }
 0x2e2   : > { %v1221_v40 = vsel %vm1219_vm4, %v1214_v38, %v1220_v39 }
 0x2e3   : > { %1222 = vst [vmem:[#allocation2] sm:$0xf] %v1221_v40 }
 0x2ea   : > { %v1224_v41 = vld [vmem:[#allocation2 + $0x1] sm:$0x3] }
 0x2eb   : > { %v1225_v42 = vld [vmem:[#allocation2 + $0x2] sm:$0x3]  ;;  %v1223_v43 = vld [vmem:[#allocation2] sm:$0x3]  ;;  %v1227_v44 = vpack.c.bf16 %v1224_v41, %v1224_v41 }
 0x2ec   : > { %v1228_v45 = vpack.c.bf16 %v1225_v42, %v1225_v42  ;;  %v1226_v46 = vpack.c.bf16 %v1223_v43, %v1223_v43 }
 0x2ed   : > { %1463 = vmatprep.mubr.bf16.mxu0 %v1227_v44 }
 0x2ee   : > { %1902 = vmatmul.mubr.bf16.vlgmr.msra.gmra.mrb[12].mxu1 %v1228_v45  ;;  %1464 = vmatmul.mubr.bf16.vlgmr.msra.gmra.mrb[12].mxu0 %v1226_v46 }
 0x3c1   : > { %v1505_v47 = vpop.f32.mrb[12].mxu1  ;;  %v1810_v49 = vpop.f32.mrb[12].mxu0 }
 0x3c2   : > { %v1903_v50 = vpop.f32.mrb[13].mxu1  ;;  %v1811_v51 = vpop.f32.mrb[13].mxu0 }
 0x3c3   : > { %v1508_v52 = vpop.f32.mrb[14].mxu1  ;;  %v1812_v53 = vadd.f32 %v1811_v51, %v1810_v49  ;;  %v1813_v54 = vpop.f32.mrb[14].mxu0 }
 0x3c4   : > { %v1904_v55 = vpop.f32.mrb[15].mxu1  ;;  %v1814_v56 = vpop.f32.mrb[15].mxu0 }
 0x3c5   : > { %v1466_v57 = vadd.f32 %v1812_v53, %v1285_v48 }
 0x3c7   : > { %v1506_v58 = vadd.f32 %v1505_v47, %v1466_v57 }
 0x3c9   : > { %1512 = vst.msk [vmem:[%s327_s17] sm:$0x3] %vm1511_vm5, %v1506_v58 }
 0x3ca   : > { %2058 = shalt.err (!%p2055_p3)
}
 0x3cb   : > { %s2059_s22 = scalar_lea.hbm %s2563_s25, 32  ;;  %s2063_s29 = scalar_lea.hbm %s2614_s9, 64 }
 0x3cc   : > { %p2060_p4 = scmp.ne.s32.totalorder %s2563_s25, %s2059_s22  ;;  %p2064_p9 = scmp.lt.u32.totalorder %s2563_s25, %s2614_s9 }
 0x3cd   : > { %p2065_p10 = scmp.lt.u32.totalorder %s2063_s29, %s2059_s22  ;;  %p2067_p12 = scmp.lt.u32.totalorder %s2059_s22, %s2563_s25 }
 0x3ce   : > { %p2061_p7 = pnand %p2060_p4, %p2204_p5 }
 0x3cf   : > { %p2066_p11 = por %p2065_p10, %p2064_p9 }
 0x3d0   : > { %p2062_p8 = pneg %p2061_p7 }
 0x3d1   : > { %p2068_p13 = por %p2067_p12, %p2066_p11 }
 0x3d3   : > { %p2069_p0 = pnand %p2068_p13, %p2062_p8 }
 0x3d5   : > { %2072 = shalt.err (!%p2069_p0)
}
 0x3d6   : > { %1906 = dma.vmem_to_hbm [thread:$0]  (%p2204_p5), %s2565_s18, 32, %s2563_s25, %s1514_s26  }
 0x3d7 PF: > { %p1912_p1 = scmp.ge.s32.totalorder %s2107_s14, 2  ;;  %s1539_s24 = sand.u32 1, %s2095_s11  }
 0x3d8   : > { %s1540_s27 = scalar_lea.sflag [#allocation6], %s1539_s24 }
 0x3d9   : > { %p1909_p2 = pnand %p1912_p1, %p2208_p6 }
 0x3db   : > { %2090 = dma.done.wait (!%p1909_p2), %s1540_s27, 32  }
 0x3dc   : > { %2092 = vsyncadd (!%p1909_p2), %s1540_s27, 4294967264  ;;  %p21_p3 = scmp.ge.s32.totalorder %s2191_s16, 4   ;;  %s2617_s11 = smov %s2099_s12 }
 0x3dd   : > { %s2618_s12 = smov %s2103_s13  ;;  %s2619_s13 = smov %s2202_s19 }
 0x3de   : > { %s2620_s14 = smov %s2191_s16  ;;  %23 = sbr.rel (!%p21_p3) target bundleno = 6 (0x6), region = 100 }
 0x3e5   :  { %1545 = vsyncpa [#allocation6], 1 }
 0x3e6   :  { %1547 = vsyncpa [#allocation6 + $0x1], 1 }

</bundles_post_ra>
